<compile_context>
chip_gen: v7x
topology: tpu7x:2x2x1
jax: 0.10.0
libtpu: 0.0.40
codegen_flags: <defaults>
</compile_context>

<pallas_src>
import functools

import numpy as np

import jax
import jax.numpy as jnp
from jax.experimental import pallas as pl
from jax.experimental.pallas import tpu as pltpu

LANE = 128  # vreg lane width (last dim)


def _round_up(n, m):
    return ((n + m - 1) // m) * m


def _pad_to(arr, shape):
    pads = [(0, s - d) for d, s in zip(arr.shape, shape)]
    if all(p == (0, 0) for p in pads):
        return arr
    return jnp.pad(arr, pads)


def simple_nn_kernel(x_ref, w1_ref, b1_ref, w2_ref, b2_ref, o_ref):
    # fc1: [TB, I] @ [I, Hp] on the MXU (bf16 operands, f32 accumulation).
    h = jnp.dot(x_ref[...], w1_ref[...], preferred_element_type=jnp.float32)
    # bias + ReLU in f32 on the VPU.
    h = jnp.maximum(h + b1_ref[...], 0.0)
    # fc2: re-feed the MXU in the compute dtype, accumulate in f32.
    # Cp % 128 == 0 -> unmasked, lane-dense output store.
    y = jnp.dot(h.astype(w2_ref.dtype), w2_ref[...],
                preferred_element_type=jnp.float32)
    o_ref[...] = (y + b2_ref[...]).astype(o_ref.dtype)


def _forward(x, w1_p, b1_p, w2_p, b2_p, *, num_classes, block_b,
             compute_dtype, out_dtype):
    B, I = x.shape
    H_p = w1_p.shape[1]
    C_p = w2_p.shape[1]

    elt_w = np.dtype(compute_dtype).itemsize
    elt_o = np.dtype(out_dtype).itemsize
    granule = 8 if elt_w >= 4 else 16  # bf16 packs 16 rows per vreg sublane dim

    # Batch tiling that minimizes padding instead of min(block_b, B).
    n_b = max(1, pl.cdiv(B, block_b))
    TB = _round_up(pl.cdiv(B, n_b), granule)
    B_p = _round_up(B, TB)
    n_b = B_p // TB

    # Only the batch dim of x is (zero-)padded; feature dim stays unpadded.
    x_p = _pad_to(x.astype(compute_dtype), (B_p, I))

    # VMEM budget: double-buffered resident weights/biases + streamed x/out
    # tiles, with headroom; capped at 64 MiB (v7x physical per-TC VMEM).
    resident = (I * H_p + H_p * C_p) * elt_w + (H_p + C_p) * 4
    streamed = TB * I * elt_w + TB * C_p * elt_o
    vmem_limit = int(min(64 << 20,
                         max(32 << 20, 3 * (resident + streamed) + (4 << 20))))

    flops = 2 * B_p * (I * H_p + H_p * C_p)
    bytes_accessed = (B_p * I * elt_w                       # x
                      + (I * H_p + H_p * C_p) * elt_w       # weights
                      + (H_p + C_p) * 4                     # biases (f32)
                      + B_p * C_p * elt_o)                  # output

    out_p = pl.pallas_call(
        simple_nn_kernel,
        out_shape=jax.ShapeDtypeStruct((B_p, C_p), out_dtype),
        grid_spec=pltpu.PrefetchScalarGridSpec(
            num_scalar_prefetch=0,
            grid=(n_b,),
            in_specs=[
                # x: new batch tile per grid step (feature dim = full array dim).
                pl.BlockSpec((TB, I), lambda i: (i, 0)),
                # weights / biases: same block every step -> VMEM-resident.
                pl.BlockSpec((I, H_p), lambda i: (0, 0)),
                pl.BlockSpec((1, H_p), lambda i: (0, 0)),
                pl.BlockSpec((H_p, C_p), lambda i: (0, 0)),
                pl.BlockSpec((1, C_p), lambda i: (0, 0)),
            ],
            out_specs=pl.BlockSpec((TB, C_p), lambda i: (i, 0)),
        ),
        compiler_params=pltpu.CompilerParams(
            dimension_semantics=("parallel",),
            vmem_limit_bytes=vmem_limit,
        ),
        cost_estimate=pl.CostEstimate(
            flops=flops, transcendentals=0, bytes_accessed=bytes_accessed),
    )(x_p, w1_p, b1_p, w2_p, b2_p)

    # Padded batch rows / padded class columns sliced away (fuses under jit).
    return out_p[:B, :num_classes]


def make_simple_nn(w1, b1, w2, b2, *, block_b=512,
                   compute_dtype=jnp.bfloat16, out_dtype=jnp.float32):
    """Pad/cast the parameters once; return a jitted forward(x) -> logits.

    w1: [I, H]; b1: [H] or [1, H]; w2: [H, C]; b2: [C] or [1, C].
    forward(x) takes x: [B, I] and returns [B, C] (same semantics as
    SimpleNN.forward: fc1 -> ReLU -> fc2).
    """
    I, H = w1.shape
    C = w2.shape[1]
    H_p = _round_up(H, LANE)   # lane-dense hidden activations
    C_p = _round_up(C, LANE)   # lane-dense (unmasked) output store

    # Zero padding is exact: padded hidden units are ReLU(0 + 0) = 0 and feed
    # zero rows of w2; padded class columns are sliced off in _forward.
    w1_p = _pad_to(jnp.asarray(w1), (I, H_p)).astype(compute_dtype)
    b1_p = _pad_to(jnp.asarray(b1).reshape(1, -1), (1, H_p)).astype(jnp.float32)
    w2_p = _pad_to(jnp.asarray(w2), (H_p, C_p)).astype(compute_dtype)
    b2_p = _pad_to(jnp.asarray(b2).reshape(1, -1), (1, C_p)).astype(jnp.float32)

    fwd = functools.partial(
        _forward, w1_p=w1_p, b1_p=b1_p, w2_p=w2_p, b2_p=b2_p,
        num_classes=C, block_b=block_b,
        compute_dtype=compute_dtype, out_dtype=out_dtype)
    return jax.jit(fwd)


def reference(x, w1, b1, w2, b2):
    h = jnp.maximum(x @ w1 + b1.reshape(1, -1), 0.0)
    return h @ w2 + b2.reshape(1, -1)


if __name__ == "__main__":
    # Shapes implied by SimpleNN(input_size, hidden_size, num_classes).
    B, input_size, hidden_size, num_classes = 8, 32, 64, 16

    key = jax.random.PRNGKey(0)
    kx, kw1, kb1, kw2, kb2 = jax.random.split(key, 5)

    x = jax.random.normal(kx, (B, input_size), dtype=jnp.float32)

    # Deterministic PyTorch-style init (uniform in +-1/sqrt(fan_in)).
    bound1 = 1.0 / (input_size ** 0.5)
    w1 = jax.random.uniform(kw1, (input_size, hidden_size),
                            minval=-bound1, maxval=bound1, dtype=jnp.float32)
    b1 = jax.random.uniform(kb1, (hidden_size,),
                            minval=-bound1, maxval=bound1, dtype=jnp.float32)

    bound2 = 1.0 / (hidden_size ** 0.5)
    w2 = jax.random.uniform(kw2, (hidden_size, num_classes),
                            minval=-bound2, maxval=bound2, dtype=jnp.float32)
    b2 = jax.random.uniform(kb2, (num_classes,),
                            minval=-bound2, maxval=bound2, dtype=jnp.float32)

    forward = make_simple_nn(w1, b1, w2, b2)     # params padded/cast once
    out = jax.block_until_ready(forward(x))      # single jitted dispatch

    ref = reference(x, w1, b1, w2, b2)
    assert out.shape == (B, num_classes)
    assert out.dtype == jnp.float32
    # bf16 MXU operands (f32 accumulation) vs f32 reference -> looser tolerance.
    max_err = float(jnp.max(jnp.abs(out - ref)))
    assert jnp.allclose(out, ref, atol=5e-2, rtol=5e-2), max_err

    print("KERNEL_OK")
</pallas_src>

<mosaic_0001>
module attributes {stable_mosaic.version = 11 : i64} {
  func.func @simple_nn_kernel(%arg0: i32, %arg1: memref<16x32xbf16, #tpu.memory_space<vmem>>, %arg2: memref<32x128xbf16, #tpu.memory_space<vmem>>, %arg3: memref<1x128xf32, #tpu.memory_space<vmem>>, %arg4: memref<128x128xbf16, #tpu.memory_space<vmem>>, %arg5: memref<1x128xf32, #tpu.memory_space<vmem>>, %arg6: memref<16x128xf32, #tpu.memory_space<vmem>>) attributes {dimension_semantics = [#tpu.dimension_semantics<parallel>], iteration_bounds = array<i64: 1>, scalar_prefetch = 0 : i64, scratch_operands = 0 : i64, tpu.core_type = #tpu.core_type<tc>, window_params = [{transform_indices = @transform_0, window_bounds = array<i64: 16, 32>}, {pipeline_mode = #tpu.pipeline_mode<synchronous>, transform_indices = @transform_1, window_bounds = array<i64: 32, 128>}, {pipeline_mode = #tpu.pipeline_mode<synchronous>, transform_indices = @transform_2, window_bounds = array<i64: 1, 128>}, {pipeline_mode = #tpu.pipeline_mode<synchronous>, transform_indices = @transform_3, window_bounds = array<i64: 128, 128>}, {pipeline_mode = #tpu.pipeline_mode<synchronous>, transform_indices = @transform_4, window_bounds = array<i64: 1, 128>}, {transform_indices = @transform_5, window_bounds = array<i64: 16, 128>}]} {
    %c0 = arith.constant 0 : index
    %c0_0 = arith.constant 0 : index
    %0 = vector.load %arg1[%c0, %c0_0] : memref<16x32xbf16, #tpu.memory_space<vmem>>, vector<16x32xbf16>
    %c0_1 = arith.constant 0 : index
    %c0_2 = arith.constant 0 : index
    %1 = vector.load %arg2[%c0_1, %c0_2] : memref<32x128xbf16, #tpu.memory_space<vmem>>, vector<32x128xbf16>
    %cst = arith.constant dense<0.000000e+00> : vector<16x128xf32>
    %2 = tpu.matmul %0, %1, %cst {dimension_numbers = #tpu.dot_dimension_numbers<[1], [0], [0], [1], [0, 0, 1, 1], [], []>} : vector<16x32xbf16>, vector<32x128xbf16>, vector<16x128xf32> -> vector<16x128xf32>
    %c0_3 = arith.constant 0 : index
    %c0_4 = arith.constant 0 : index
    %3 = vector.load %arg3[%c0_3, %c0_4] : memref<1x128xf32, #tpu.memory_space<vmem>>, vector<1x128xf32>
    %4 = vector.broadcast %3 : vector<1x128xf32> to vector<16x128xf32>
    %5 = arith.addf %2, %4 : vector<16x128xf32>
    %cst_5 = arith.constant 0.000000e+00 : f32
    %6 = vector.broadcast %cst_5 : f32 to vector<16x128xf32>
    %7 = arith.maximumf %5, %6 : vector<16x128xf32>
    %8 = arith.truncf %7 : vector<16x128xf32> to vector<16x128xbf16>
    %c0_6 = arith.constant 0 : index
    %c0_7 = arith.constant 0 : index
    %9 = vector.load %arg4[%c0_6, %c0_7] : memref<128x128xbf16, #tpu.memory_space<vmem>>, vector<128x128xbf16>
    %cst_8 = arith.constant dense<0.000000e+00> : vector<16x128xf32>
    %10 = tpu.matmul %8, %9, %cst_8 {dimension_numbers = #tpu.dot_dimension_numbers<[1], [0], [0], [1], [0, 0, 1, 1], [], []>} : vector<16x128xbf16>, vector<128x128xbf16>, vector<16x128xf32> -> vector<16x128xf32>
    %c0_9 = arith.constant 0 : index
    %c0_10 = arith.constant 0 : index
    %11 = vector.load %arg5[%c0_9, %c0_10] : memref<1x128xf32, #tpu.memory_space<vmem>>, vector<1x128xf32>
    %12 = vector.broadcast %11 : vector<1x128xf32> to vector<16x128xf32>
    %13 = arith.addf %10, %12 : vector<16x128xf32>
    %c0_11 = arith.constant 0 : index
    %c0_12 = arith.constant 0 : index
    %14 = vector.load %arg6[%c0_11, %c0_12] : memref<16x128xf32, #tpu.memory_space<vmem>>, vector<16x128xf32>
    tpu.vector_store %arg6[%c0_11, %c0_12], %13 {strides = array<i32>} : memref<16x128xf32, #tpu.memory_space<vmem>>, vector<16x128xf32>,
    return
  }
  func.func @transform_0(%arg0: i32) -> (i32, i32) {
    %c0_i32 = arith.constant 0 : i32
    %c0_i32_0 = arith.constant 0 : i32
    return %arg0, %c0_i32 : i32, i32
  }
  func.func @transform_1(%arg0: i32) -> (i32, i32) {
    %c0_i32 = arith.constant 0 : i32
    %c0_i32_0 = arith.constant 0 : i32
    %c0_i32_1 = arith.constant 0 : i32
    return %c0_i32, %c0_i32_0 : i32, i32
  }
  func.func @transform_2(%arg0: i32) -> (i32, i32) {
    %c0_i32 = arith.constant 0 : i32
    %c0_i32_0 = arith.constant 0 : i32
    %c0_i32_1 = arith.constant 0 : i32
    return %c0_i32, %c0_i32_0 : i32, i32
  }
  func.func @transform_3(%arg0: i32) -> (i32, i32) {
    %c0_i32 = arith.constant 0 : i32
    %c0_i32_0 = arith.constant 0 : i32
    %c0_i32_1 = arith.constant 0 : i32
    return %c0_i32, %c0_i32_0 : i32, i32
  }
  func.func @transform_4(%arg0: i32) -> (i32, i32) {
    %c0_i32 = arith.constant 0 : i32
    %c0_i32_0 = arith.constant 0 : i32
    %c0_i32_1 = arith.constant 0 : i32
    return %c0_i32, %c0_i32_0 : i32, i32
  }
  func.func @transform_5(%arg0: i32) -> (i32, i32) {
    %c0_i32 = arith.constant 0 : i32
    %c0_i32_0 = arith.constant 0 : i32
    return %arg0, %c0_i32 : i32, i32
  }
}

</mosaic_0001>

<bundles_post_ra>
// kernel: _forward.1
= control target key start
LH: loop header
LB: loop body
LE: loop exit
PB: predicated region body
PF: predicated region fallthrough
CT: control target
= control target key end

     0   :  { %10 = vsyncpa [#allocation3], 0  ;;  %s326_s18 = smov [#allocation2]   ;;  %s394_s0 = inlined_call_operand.vmem [shape: bf16[16,32], index: 0, kind: input, shape index: {}]   ;;  %s395_s1 = inlined_call_operand.vmem [shape: bf16[32,128], index: 1, kind: input, shape index: {}]   ;;  %s396_s2 = inlined_call_operand.vmem [shape: f32[1,128], index: 2, kind: input, shape index: {}]   ;;  %s397_s3 = inlined_call_operand.hbm [shape: bf16[128,128], index: 3, kind: input, shape index: {}]   ;;  %s398_s4 = inlined_call_operand.vmem [shape: f32[1,128], index: 4, kind: input, shape index: {}]   ;;  %s399_s5 = inlined_call_operand.vmem [shape: f32[16,128], index: 5, kind: output, shape index: {}]  }
   0x1   :  { %s22_s19 = sshll.u32 %s326_s18, 4  ;;  %s302_s22 = scalar_lea.hbm %s397_s3, 1024  ;;  %s23_s19 = int_to_ptr.vmem [resolvable:$true] %s22_s19 }
   0x2   :  { %p303_p0 = scmp.ne.s32.totalorder %s397_s3, %s302_s22  ;;  %p306_p1 = scmp.lt.u32.totalorder %s302_s22, %s397_s3 }
   0x4   :  { %p308_p2 = pnand %p306_p1, %p303_p0 }
   0x6   :  { %311 = shalt.err (!%p308_p2)
}
   0x7   :  { %s312_s27 = scalar_lea.vmem %s23_s19, 1024  ;;  %p317_p4 = scmp.lt.s32.totalorder %s23_s19, %s23_s19 }
   0x8   :  { %p313_p3 = scmp.ne.s32.totalorder %s23_s19, %s312_s27  ;;  %p318_p5 = scmp.lt.s32.totalorder %s312_s27, %s312_s27 }
   0xa   :  { %p319_p6 = por %p318_p5, %p317_p4 }
   0xc   :  { %p320_p7 = pnand %p319_p6, %p313_p3 }
   0xe   :  { %323 = shalt.err (!%p320_p7)
}
   0xf   :  { %s327_s28 = smov 64   ;;  %s328_s29 = smov 4  }
  0x10   :  { %28 = dma.hbm_to_vmem [thread:$0]  %s397_s3, 1024, %s23_s19, [#allocation3], %s327_s28, %s327_s28, %s328_s29  }
  0x11   :  { %324 = dma.done.wait [#allocation3], 1024  }
  0x12   :  { %325 = vsyncadd [#allocation3], 4294966272  ;;  %v329_v0 = vmov 0.0   ;;  %vm330_vm0 = vmmov 0   ;;  %v291_v1 = vld [vmem:[%s395_s1] sm:$0xff]   ;;  %v292_v2 = vld [vmem:[%s395_s1 + $0x8] sm:$0xff]  }
  0x13   :  { %258 = vmatprep.subr.bf16.mxu0 %v329_v0  ;;  %262 = vmatprep.mubr.msk.bf16.mxu0 %vm330_vm0, %v329_v0  ;;  %v294_v3 = vld [vmem:[#allocation2] sm:$0xff]   ;;  %v295_v5 = vld [vmem:[#allocation2 + $0x8] sm:$0xff]   ;;  %vm65_vm1 = vcmask 261120   ;;  %v296_v6 = vld [vmem:[#allocation2 + $0x10] sm:$0xff]  }
  0x14   :  { %266 = vmatprep.subr.bf16.mxu1 %v329_v0  ;;  %282 = vmatprep.mubr.msk.bf16.mxu1 %vm330_vm0, %v329_v0  ;;  %v293_v4 = vld [vmem:[%s394_s0] sm:$0xff]   ;;  %v297_v7 = vld [vmem:[#allocation2 + $0x18] sm:$0xff]   ;;  %v299_v9 = vld [vmem:[#allocation2 + $0x28] sm:$0xff]  }
  0x15   :  { %259 = vmatpush3.bf16.msra.mxu0 %v291_v1  ;;  %267 = vmatpush3.bf16.msra.mxu1 %v294_v3  ;;  %v298_v8 = vld [vmem:[#allocation2 + $0x20] sm:$0xff]   ;;  %v300_v10 = vld [vmem:[#allocation2 + $0x30] sm:$0xff]   ;;  %v301_v11 = vld [vmem:[#allocation2 + $0x38] sm:$0xff]  }
  0x16   :  { %260 = vmatprep.subr.bf16.mxu0 %v329_v0  ;;  %268 = vmatprep.subr.bf16.mxu1 %v329_v0  ;;  %v232_v12 = vld [vmem:[%s396_s2] ss:$0 sm:$0xff] }
  0x17   :  { %v237_v22 = vld [vmem:[%s398_s4] ss:$0 sm:$0xff] }
  0x19   :  { %261 = vmatpush3.bf16.msra.mxu0 %v292_v2  ;;  %269 = vmatpush3.bf16.msra.mxu1 %v295_v5 }
  0x1a   :  { %270 = vmatprep.subr.bf16.mxu1 %v329_v0 }
  0x1c   :  { %263 = vmatmul.mubr.msk.bf16.vlgmr.msra.gmra.mrb[0].mxu0 %vm65_vm1, %v293_v4 }
  0x1d   :  { %271 = vmatpush3.bf16.msra.mxu1 %v296_v6 }
  0x1e   :  { %272 = vmatprep.subr.bf16.mxu1 %v329_v0 }
  0x21   :  { %273 = vmatpush3.bf16.msra.mxu1 %v297_v7 }
  0x22   :  { %274 = vmatprep.subr.bf16.mxu1 %v329_v0 }
  0x25   :  { %275 = vmatpush3.bf16.msra.mxu1 %v298_v8 }
  0x26   :  { %276 = vmatprep.subr.bf16.mxu1 %v329_v0 }
  0x29   :  { %277 = vmatpush3.bf16.msra.mxu1 %v299_v9 }
  0x2a   :  { %278 = vmatprep.subr.bf16.mxu1 %v329_v0 }
  0x2d   :  { %279 = vmatpush3.bf16.msra.mxu1 %v300_v10 }
  0x2e   :  { %280 = vmatprep.subr.bf16.mxu1 %v329_v0 }
  0x31   :  { %281 = vmatpush3.bf16.msra.mxu1 %v301_v11 }
  0xef   :  { %v103_v13 = vpop.f32.mrb[0].mxu0 }
  0xf0   :  { %v104_v14 = vadd.f32 %v232_v12, %v103_v13  ;;  %v264_v15 = vpop.f32.mrb[1].mxu0 }
  0xf1   :  { %v106_v16 = vpop.f32.mrb[2].mxu0 }
  0xf2   :  { %v107_v17 = vadd.f32 %v232_v12, %v106_v16  ;;  %v265_v18 = vpop.f32.mrb[3].mxu0  ;;  %v110_v19 = vmax.f32 %v104_v14, 0.0 }
  0xf4   :  { %v111_v20 = vmax.f32 %v107_v17, 0.0 }
  0xf6   :  { %v112_v21 = vpack.c.bf16 %v111_v20, %v110_v19 }
  0xf8   :  { %283 = vmatmul.mubr.bf16.vlgmr.msra.gmra.mrb[0].mxu1 %v112_v21 }
 0x1cb   :  { %v218_v23 = vpop.f32.mrb[0].mxu1 }
 0x1cc   :  { %v219_v24 = vadd.f32 %v237_v22, %v218_v23  ;;  %v284_v25 = vpop.f32.mrb[1].mxu1 }
 0x1cd   :  { %v221_v26 = vpop.f32.mrb[2].mxu1 }
 0x1ce   :  { %225 = vst [vmem:[%s399_s5] sm:$0xff] %v219_v24  ;;  %v222_v27 = vadd.f32 %v237_v22, %v221_v26  ;;  %v285_v28 = vpop.f32.mrb[3].mxu1 }
 0x1d0   :  { %226 = vst [vmem:[%s399_s5 + $0x8] sm:$0xff] %v222_v27 }
 0x1d1   :  { %231 = vsyncpa [#allocation3], 1 }

</bundles_post_ra>
